<compile_context>
chip_gen: v7x
topology: tpu7x:2x2x1
jax: 0.10.0
libtpu: 0.0.40
codegen_flags: <defaults>
</compile_context>

<pallas_src>
import functools

import jax
import jax.numpy as jnp
from jax import lax
from jax.experimental import pallas as pl
from jax.experimental.pallas import tpu as pltpu

_LEAKY_SLOPE = 0.02  # nn.LeakyReLU(0.02)


def _decoder_layer_kernel(x_ref, mask_ref, w1_ref, w2_ref, *rest,
                          H, W, has_translation):
    if has_translation:
        wt_ref, o_ref = rest
    else:
        (o_ref,) = rest

    Hp, Wp = H + 2, W + 2
    L0 = Hp * Wp          # pixels of the zero-padded image (lane axis)
    M0 = Wp + 1           # extra zero margin so every 3x3 tap is a static slice

    x = x_ref[0].astype(jnp.float32)           # (Cin, Ltot = L0 + 2*M0)
    mask = mask_ref[...].astype(jnp.float32)   # (1, L0): 1 on interior pixels

    def im2col(buf):
        # buf: (C, L0 + 2*M0) zero-margined flattened padded image.
        cols = []
        for dy in range(3):
            for dx in range(3):
                start = M0 + (dy - 1) * Wp + (dx - 1)
                cols.append(buf[:, start:start + L0])
        return jnp.concatenate(cols, axis=0)   # (9*C, L0)

    # conv_1: one fused MXU matmul over all 9 taps.
    h1 = jnp.dot(w1_ref[...].astype(jnp.float32), im2col(x),
                 preferred_element_type=jnp.float32)           # (Cmid, L0)
    h1 = jnp.maximum(h1, _LEAKY_SLOPE * h1)                    # LeakyReLU(0.02)
    h1 = h1 * mask                                             # re-zero the pad ring

    # re-attach zero margins so conv_2 taps are again static lane slices.
    cmid = h1.shape[0]
    zpad = jnp.zeros((cmid, M0), jnp.float32)
    h1_full = jnp.concatenate([zpad, h1, zpad], axis=1)        # (Cmid, Ltot)

    # conv_2: second fused MXU matmul.
    h2 = jnp.dot(w2_ref[...].astype(jnp.float32), im2col(h1_full),
                 preferred_element_type=jnp.float32)           # (Cout, L0)

    # residual path (optionally through the 1x1 translation conv).
    x_center = x[:, M0:M0 + L0]                                # (Cin, L0)
    if has_translation:
        ident = jnp.dot(wt_ref[...].astype(jnp.float32), x_center,
                        preferred_element_type=jnp.float32)    # (Cout, L0)
    else:
        ident = x_center

    o_ref[0] = (h2 + ident).astype(o_ref.dtype)


def decoder_layer_pallas(x_nchw, params, *, upsample=False):
    """Forward pass of _Decoder_layer (groups=1).

    x_nchw: (N, in_planes, H, W)
    params: w_conv1 (Cmid, Cin, 3, 3), w_conv2 (Cout, Cmid, 3, 3),
            optional w_translation (Cout, Cin).
    Returns (N, out_planes, H', W')  (H'=2H if upsample else H).
    """
    # TODO(synk): grouped convolutions (groups > 1) are not implemented in the kernel.
    if upsample:
        # TODO(synk): 2x bilinear upsample runs in plain JAX (jax.image.resize),
        # outside the Pallas kernel.
        N, C, H, W = x_nchw.shape
        x_nchw = jax.image.resize(x_nchw, (N, C, 2 * H, 2 * W), method="bilinear")

    w1 = params["w_conv1"]               # (Cmid, Cin, 3, 3)
    w2 = params["w_conv2"]               # (Cout, Cmid, 3, 3)
    wt = params.get("w_translation")     # (Cout, Cin) or None
    has_translation = wt is not None

    N, Cin, H, W = x_nchw.shape
    Cmid = w1.shape[0]
    Cout = w2.shape[0]
    Hp, Wp = H + 2, W + 2
    L0 = Hp * Wp
    M0 = Wp + 1
    Ltot = L0 + 2 * M0

    # NCHW -> spatially zero-padded, flattened, zero-margined. Pads + reshape only;
    # no NCHW<->NHWC transpose passes over HBM.
    x_pad = jnp.pad(x_nchw, ((0, 0), (0, 0), (1, 1), (1, 1)))
    x_full = jnp.pad(x_pad.reshape(N, Cin, L0), ((0, 0), (0, 0), (M0, M0)))

    # interior-pixel mask of the padded frame, shape (1, L0).
    py = jnp.arange(Hp)[:, None]
    px = jnp.arange(Wp)[None, :]
    mask = (((py >= 1) & (py <= H) & (px >= 1) & (px <= W))
            .astype(x_nchw.dtype).reshape(1, L0))

    # (Cout, Cin, 3, 3) -> (Cout, 9*Cin) with tap-major / channel-minor columns
    # matching the in-kernel im2col row ordering.
    w1m = jnp.transpose(w1, (0, 2, 3, 1)).reshape(Cmid, 9 * Cin)
    w2m = jnp.transpose(w2, (0, 2, 3, 1)).reshape(Cout, 9 * Cmid)

    per_batch = lambda n: (n, 0, 0)
    full2d = lambda n: (0, 0)

    in_specs = [
        pl.BlockSpec((1, Cin, Ltot), per_batch),      # x (lane-dense spatial axis)
        pl.BlockSpec((1, L0), full2d),                # interior mask
        pl.BlockSpec((Cmid, 9 * Cin), full2d),        # fused conv_1 weights
        pl.BlockSpec((Cout, 9 * Cmid), full2d),       # fused conv_2 weights
    ]
    inputs = [x_full, mask, w1m, w2m]
    if has_translation:
        in_specs.append(pl.BlockSpec((Cout, Cin), full2d))
        inputs.append(wt)

    flops = 2 * N * L0 * (9 * Cin * Cmid + 9 * Cmid * Cout
                          + (Cin * Cout if has_translation else 0))
    bytes_accessed = 4 * (x_full.size + mask.size + w1m.size + w2m.size
                          + (wt.size if has_translation else 0) + N * Cout * L0)

    kernel = functools.partial(_decoder_layer_kernel, H=H, W=W,
                               has_translation=has_translation)

    # TODO(synk): for very large H*W (VMEM-sized images on v7x), tile the spatial
    # axis with a halo instead of taking the whole padded image per batch step.
    out = pl.pallas_call(
        kernel,
        out_shape=jax.ShapeDtypeStruct((N, Cout, L0), x_nchw.dtype),
        grid_spec=pltpu.PrefetchScalarGridSpec(
            num_scalar_prefetch=0,
            grid=(N,),
            in_specs=in_specs,
            out_specs=pl.BlockSpec((1, Cout, L0), per_batch),
        ),
        compiler_params=pltpu.CompilerParams(
            dimension_semantics=("parallel",)),
        cost_estimate=pl.CostEstimate(flops=flops, transcendentals=0,
                                      bytes_accessed=bytes_accessed),
    )(*inputs)

    # (N, Cout, Hp*Wp) -> crop the pad ring -> NCHW.
    return out.reshape(N, Cout, Hp, Wp)[:, :, 1:1 + H, 1:1 + W]


def decoder_layer_reference(x, params, *, upsample=False):
    """Pure-JAX reference mirroring the PyTorch forward (groups=1)."""
    if upsample:
        N, C, H, W = x.shape
        x = jax.image.resize(x, (N, C, 2 * H, 2 * W), method="bilinear")
    dn = ("NCHW", "OIHW", "NCHW")
    h = lax.conv_general_dilated(x, params["w_conv1"], (1, 1),
                                 ((1, 1), (1, 1)), dimension_numbers=dn)
    h = jnp.where(h >= 0, h, _LEAKY_SLOPE * h)
    h = lax.conv_general_dilated(h, params["w_conv2"], (1, 1),
                                 ((1, 1), (1, 1)), dimension_numbers=dn)
    wt = params.get("w_translation")
    if wt is not None:
        ident = lax.conv_general_dilated(x, wt[:, :, None, None], (1, 1),
                                         ((0, 0), (0, 0)), dimension_numbers=dn)
    else:
        ident = x
    return h + ident


def init_params(key, in_planes, out_planes, wide_width=True):
    middle = (in_planes if in_planes > out_planes else out_planes) if wide_width else out_planes
    ks = jax.random.split(key, 3)
    scale = 0.1
    p = {
        "w_conv1": scale * jax.random.normal(ks[0], (middle, in_planes, 3, 3), jnp.float32),
        "w_conv2": scale * jax.random.normal(ks[1], (out_planes, middle, 3, 3), jnp.float32),
    }
    if in_planes != out_planes:
        p["w_translation"] = scale * jax.random.normal(ks[2], (out_planes, in_planes), jnp.float32)
    return p


if __name__ == "__main__":
    key = jax.random.PRNGKey(0)
    kx, kp = jax.random.split(key)

    # case 1: in_planes != out_planes (translation path), no upsample.
    N, in_planes, out_planes, H, W = 2, 8, 4, 16, 16
    x = jax.random.normal(kx, (N, in_planes, H, W), jnp.float32)
    params = init_params(kp, in_planes, out_planes, wide_width=True)

    y = jax.block_until_ready(decoder_layer_pallas(x, params, upsample=False))
    y_ref = jax.block_until_ready(decoder_layer_reference(x, params, upsample=False))
    assert y.shape == (N, out_planes, H, W)
    assert jnp.allclose(y, y_ref, atol=1e-4, rtol=1e-4), "mismatch vs reference"

    # case 2: in_planes == out_planes (pure residual), with 2x bilinear upsample.
    params2 = init_params(jax.random.PRNGKey(1), 8, 8, wide_width=True)
    x2 = jax.random.normal(jax.random.PRNGKey(2), (N, 8, H, W), jnp.float32)
    y2 = jax.block_until_ready(decoder_layer_pallas(x2, params2, upsample=True))
    y2_ref = jax.block_until_ready(decoder_layer_reference(x2, params2, upsample=True))
    assert y2.shape == (N, 8, 2 * H, 2 * W)
    assert jnp.allclose(y2, y2_ref, atol=1e-4, rtol=1e-4), "mismatch vs reference (upsample)"

    print("KERNEL_OK")
</pallas_src>

<mosaic_0001>
module attributes {stable_mosaic.version = 11 : i64} {
  func.func @_decoder_layer_kernel(%arg0: i32, %arg1: memref<1x8x362xf32, #tpu.memory_space<vmem>>, %arg2: memref<1x324xf32, #tpu.memory_space<vmem>>, %arg3: memref<8x72xf32, #tpu.memory_space<vmem>>, %arg4: memref<4x72xf32, #tpu.memory_space<vmem>>, %arg5: memref<4x8xf32, #tpu.memory_space<vmem>>, %arg6: memref<1x4x324xf32, #tpu.memory_space<vmem>>) attributes {dimension_semantics = [#tpu.dimension_semantics<parallel>], iteration_bounds = array<i64: 2>, scalar_prefetch = 0 : i64, scratch_operands = 0 : i64, tpu.core_type = #tpu.core_type<tc>, window_params = [{transform_indices = @transform_0, window_bounds = array<i64: 1, 8, 362>}, {pipeline_mode = #tpu.pipeline_mode<synchronous>, transform_indices = @transform_1, window_bounds = array<i64: 1, 324>}, {pipeline_mode = #tpu.pipeline_mode<synchronous>, transform_indices = @transform_2, window_bounds = array<i64: 8, 72>}, {pipeline_mode = #tpu.pipeline_mode<synchronous>, transform_indices = @transform_3, window_bounds = array<i64: 4, 72>}, {pipeline_mode = #tpu.pipeline_mode<synchronous>, transform_indices = @transform_4, window_bounds = array<i64: 4, 8>}, {transform_indices = @transform_5, window_bounds = array<i64: 1, 4, 324>}]} {
    %c0 = arith.constant 0 : index
    %c0_0 = arith.constant 0 : index
    %c0_1 = arith.constant 0 : index
    %0 = vector.load %arg1[%c0, %c0_0, %c0_1] : memref<1x8x362xf32, #tpu.memory_space<vmem>>, vector<1x8x362xf32>
    %1 = vector.shape_cast %0 : vector<1x8x362xf32> to vector<8x362xf32>
    %c0_2 = arith.constant 0 : index
    %c0_3 = arith.constant 0 : index
    %2 = vector.load %arg2[%c0_2, %c0_3] : memref<1x324xf32, #tpu.memory_space<vmem>>, vector<1x324xf32>
    %c0_4 = arith.constant 0 : index
    %c0_5 = arith.constant 0 : index
    %3 = vector.load %arg3[%c0_4, %c0_5] : memref<8x72xf32, #tpu.memory_space<vmem>>, vector<8x72xf32>
    %4 = vector.extract_strided_slice %1 {offsets = [0, 0], sizes = [8, 324], strides = [1, 1]} : vector<8x362xf32> to vector<8x324xf32>
    %5 = vector.extract_strided_slice %1 {offsets = [0, 1], sizes = [8, 324], strides = [1, 1]} : vector<8x362xf32> to vector<8x324xf32>
    %6 = vector.extract_strided_slice %1 {offsets = [0, 2], sizes = [8, 324], strides = [1, 1]} : vector<8x362xf32> to vector<8x324xf32>
    %7 = vector.extract_strided_slice %1 {offsets = [0, 18], sizes = [8, 324], strides = [1, 1]} : vector<8x362xf32> to vector<8x324xf32>
    %8 = vector.extract_strided_slice %1 {offsets = [0, 19], sizes = [8, 324], strides = [1, 1]} : vector<8x362xf32> to vector<8x324xf32>
    %9 = vector.extract_strided_slice %1 {offsets = [0, 20], sizes = [8, 324], strides = [1, 1]} : vector<8x362xf32> to vector<8x324xf32>
    %10 = vector.extract_strided_slice %1 {offsets = [0, 36], sizes = [8, 324], strides = [1, 1]} : vector<8x362xf32> to vector<8x324xf32>
    %11 = vector.extract_strided_slice %1 {offsets = [0, 37], sizes = [8, 324], strides = [1, 1]} : vector<8x362xf32> to vector<8x324xf32>
    %12 = vector.extract_strided_slice %1 {offsets = [0, 38], sizes = [8, 324], strides = [1, 1]} : vector<8x362xf32> to vector<8x324xf32>
    %13 = tpu.concatenate %4, %5, %6, %7, %8, %9, %10, %11, %12 in 0 : vector<8x324xf32>, vector<8x324xf32>, vector<8x324xf32>, vector<8x324xf32>, vector<8x324xf32>, vector<8x324xf32>, vector<8x324xf32>, vector<8x324xf32>, vector<8x324xf32> -> vector<72x324xf32>
    %cst = arith.constant dense<0.000000e+00> : vector<8x324xf32>
    %14 = tpu.matmul %3, %13, %cst {dimension_numbers = #tpu.dot_dimension_numbers<[1], [0], [0], [1], [0, 0, 1, 1], [], []>} : vector<8x72xf32>, vector<72x324xf32>, vector<8x324xf32> -> vector<8x324xf32>
    %cst_6 = arith.constant 2.000000e-02 : f32
    %15 = vector.broadcast %cst_6 : f32 to vector<8x324xf32>
    %16 = arith.mulf %15, %14 : vector<8x324xf32>
    %17 = arith.maximumf %14, %16 : vector<8x324xf32>
    %18 = vector.broadcast %2 : vector<1x324xf32> to vector<8x324xf32>
    %19 = arith.mulf %17, %18 : vector<8x324xf32>
    %cst_7 = arith.constant 0.000000e+00 : f32
    %20 = vector.broadcast %cst_7 : f32 to vector<8x19xf32>
    %21 = tpu.concatenate %20, %19, %20 in 1 : vector<8x19xf32>, vector<8x324xf32>, vector<8x19xf32> -> vector<8x362xf32>
    %c0_8 = arith.constant 0 : index
    %c0_9 = arith.constant 0 : index
    %22 = vector.load %arg4[%c0_8, %c0_9] : memref<4x72xf32, #tpu.memory_space<vmem>>, vector<4x72xf32>
    %23 = vector.extract_strided_slice %21 {offsets = [0, 0], sizes = [8, 324], strides = [1, 1]} : vector<8x362xf32> to vector<8x324xf32>
    %24 = vector.extract_strided_slice %21 {offsets = [0, 1], sizes = [8, 324], strides = [1, 1]} : vector<8x362xf32> to vector<8x324xf32>
    %25 = vector.extract_strided_slice %21 {offsets = [0, 2], sizes = [8, 324], strides = [1, 1]} : vector<8x362xf32> to vector<8x324xf32>
    %26 = vector.extract_strided_slice %21 {offsets = [0, 18], sizes = [8, 324], strides = [1, 1]} : vector<8x362xf32> to vector<8x324xf32>
    %27 = vector.extract_strided_slice %21 {offsets = [0, 19], sizes = [8, 324], strides = [1, 1]} : vector<8x362xf32> to vector<8x324xf32>
    %28 = vector.extract_strided_slice %21 {offsets = [0, 20], sizes = [8, 324], strides = [1, 1]} : vector<8x362xf32> to vector<8x324xf32>
    %29 = vector.extract_strided_slice %21 {offsets = [0, 36], sizes = [8, 324], strides = [1, 1]} : vector<8x362xf32> to vector<8x324xf32>
    %30 = vector.extract_strided_slice %21 {offsets = [0, 37], sizes = [8, 324], strides = [1, 1]} : vector<8x362xf32> to vector<8x324xf32>
    %31 = vector.extract_strided_slice %21 {offsets = [0, 38], sizes = [8, 324], strides = [1, 1]} : vector<8x362xf32> to vector<8x324xf32>
    %32 = tpu.concatenate %23, %24, %25, %26, %27, %28, %29, %30, %31 in 0 : vector<8x324xf32>, vector<8x324xf32>, vector<8x324xf32>, vector<8x324xf32>, vector<8x324xf32>, vector<8x324xf32>, vector<8x324xf32>, vector<8x324xf32>, vector<8x324xf32> -> vector<72x324xf32>
    %cst_10 = arith.constant dense<0.000000e+00> : vector<4x324xf32>
    %33 = tpu.matmul %22, %32, %cst_10 {dimension_numbers = #tpu.dot_dimension_numbers<[1], [0], [0], [1], [0, 0, 1, 1], [], []>} : vector<4x72xf32>, vector<72x324xf32>, vector<4x324xf32> -> vector<4x324xf32>
    %34 = vector.extract_strided_slice %1 {offsets = [0, 19], sizes = [8, 324], strides = [1, 1]} : vector<8x362xf32> to vector<8x324xf32>
    %c0_11 = arith.constant 0 : index
    %c0_12 = arith.constant 0 : index
    %35 = vector.load %arg5[%c0_11, %c0_12] : memref<4x8xf32, #tpu.memory_space<vmem>>, vector<4x8xf32>
    %cst_13 = arith.constant dense<0.000000e+00> : vector<4x324xf32>
    %36 = tpu.matmul %35, %34, %cst_13 {dimension_numbers = #tpu.dot_dimension_numbers<[1], [0], [0], [1], [0, 0, 1, 1], [], []>} : vector<4x8xf32>, vector<8x324xf32>, vector<4x324xf32> -> vector<4x324xf32>
    %37 = arith.addf %33, %36 : vector<4x324xf32>
    %c0_14 = arith.constant 0 : index
    %c0_15 = arith.constant 0 : index
    %c0_16 = arith.constant 0 : index
    %38 = vector.load %arg6[%c0_14, %c0_15, %c0_16] : memref<1x4x324xf32, #tpu.memory_space<vmem>>, vector<1x4x324xf32>
    %39 = vector.shape_cast %38 : vector<1x4x324xf32> to vector<4x324xf32>
    %40 = vector.shape_cast %37 : vector<4x324xf32> to vector<1x4x324xf32>
    tpu.vector_store %arg6[%c0_14, %c0_15, %c0_16], %40 {strides = array<i32>} : memref<1x4x324xf32, #tpu.memory_space<vmem>>, vector<1x4x324xf32>,
    return
  }
  func.func @transform_0(%arg0: i32) -> (i32, i32, i32) {
    %c0_i32 = arith.constant 0 : i32
    %c0_i32_0 = arith.constant 0 : i32
    %c0_i32_1 = arith.constant 0 : i32
    return %arg0, %c0_i32, %c0_i32_0 : i32, i32, i32
  }
  func.func @transform_1(%arg0: i32) -> (i32, i32) {
    %c0_i32 = arith.constant 0 : i32
    %c0_i32_0 = arith.constant 0 : i32
    %c0_i32_1 = arith.constant 0 : i32
    return %c0_i32, %c0_i32_0 : i32, i32
  }
  func.func @transform_2(%arg0: i32) -> (i32, i32) {
    %c0_i32 = arith.constant 0 : i32
    %c0_i32_0 = arith.constant 0 : i32
    %c0_i32_1 = arith.constant 0 : i32
    return %c0_i32, %c0_i32_0 : i32, i32
  }
  func.func @transform_3(%arg0: i32) -> (i32, i32) {
    %c0_i32 = arith.constant 0 : i32
    %c0_i32_0 = arith.constant 0 : i32
    %c0_i32_1 = arith.constant 0 : i32
    return %c0_i32, %c0_i32_0 : i32, i32
  }
  func.func @transform_4(%arg0: i32) -> (i32, i32) {
    %c0_i32 = arith.constant 0 : i32
    %c0_i32_0 = arith.constant 0 : i32
    %c0_i32_1 = arith.constant 0 : i32
    return %c0_i32, %c0_i32_0 : i32, i32
  }
  func.func @transform_5(%arg0: i32) -> (i32, i32, i32) {
    %c0_i32 = arith.constant 0 : i32
    %c0_i32_0 = arith.constant 0 : i32
    %c0_i32_1 = arith.constant 0 : i32
    return %arg0, %c0_i32, %c0_i32_0 : i32, i32, i32
  }
}

</mosaic_0001>

<bundles_post_ra>
// kernel: tpu_custom_call.1
= control target key start
LH: loop header
LB: loop body
LE: loop exit
PB: predicated region body
PF: predicated region fallthrough
CT: control target
= control target key end

     0   :  { %10 = vsyncpa [#allocation3], 0  ;;  %s1808_s0 = inlined_call_operand.hbm [shape: f32[2,8,362], index: 0, kind: input, shape index: {}]   ;;  %s1809_s1 = inlined_call_operand.vmem [shape: f32[1,324], index: 1, kind: input, shape index: {}]   ;;  %s1810_s2 = inlined_call_operand.hbm [shape: f32[8,72], index: 2, kind: input, shape index: {}]   ;;  %s1811_s3 = inlined_call_operand.vmem [shape: f32[4,72], index: 3, kind: input, shape index: {}]   ;;  %s1812_s4 = inlined_call_operand.vmem [shape: f32[4,8], index: 4, kind: input, shape index: {}]   ;;  %s1813_s5 = inlined_call_operand.hbm [shape: f32[2,4,324], index: 5, kind: output, shape index: {}]  }
   0x1   :  { %12 = vsyncpa [#allocation3 + $0x1], 0 }
   0x2   :  { %13 = vsyncpa [#allocation6], 0 }
   0x3   :  { %14 = vsyncpa [#allocation4], 0 }
   0x4   :  { %16 = vsyncpa [#allocation4 + $0x1], 0  ;;  %s1495_s18 = smov 0   ;;  %s1497_s19 = smov 0  }
   0x5   :  { %s1499_s20 = smov 0   ;;  %s1501_s21 = smov 0  }
   0x6 LB: > { %s1516_s22 = sadd.s32 4294967295, %s1447_s21   ;;  %s1029_s23 = sadd.s32 4294967294, %s1447_s21   ;;  %s1447_s21 = sphi %s1501_s21, %s1837_s21   ;;  %s1443_s20 = sphi %s1499_s20, %s1836_s20   ;;  %s1439_s19 = sphi %s1497_s19, %s1835_s19   ;;  %s1435_s18 = sphi %s1495_s18, %s1834_s18  }
   0x7   : > { %p42_p0 = scmp.ne.s32.totalorder %s1439_s19, %s1435_s18  ;;  %p1814_p1 = scmp.eq.s32.totalorder %s1516_s22, 0 }
   0x8   : > { %p156_p3 = scmp.eq.s32.totalorder %s1029_s23, 1  ;;  %p1030_p5 = scmp.ge.s32.totalorder %s1447_s21, 1 }
   0x9   : > { %p1525_p4 = por %p1814_p1, %p42_p0  ;;  %p163_p7 = scmp.lt.s32.totalorder %s1447_s21, 3 }
   0xa   : > { %p1530_p6 = por %p156_p3, %p42_p0  ;;  %s1449_s27 = smov [#allocation5]  }
   0xb   : > { %s1817_s24 = scalar_select %p1525_p4, 1, 0 }
   0xc   : > { %s1818_s25 = scalar_select %p1530_p6, 1, 0 }
   0xd   : > { %p1535_p8 = pnand %p1030_p5, %p163_p7  ;;  %s179_s28 = sshll.u32 %s1449_s27, 4  ;;  %s180_s28 = int_to_ptr.vmem [resolvable:$true] %s179_s28 }
   0xe   : > { %s1543_s29 = sadd.s32 1, %s1447_s21   ;;  %s29_s8 = sadd.s32 1, %s1443_s20 }
   0xf   : > { %s1819_s26 = scalar_select %p1535_p8, 1, 0 }
  0x10   : > { %p1192_p10 = pneg %p1535_p8  ;;  %s26_s6 = ssub.s32 %s1447_s21, %s1543_s29 }
  0x11   : > { %p1553_p12 = scmp.eq.s32.totalorder %s26_s6, 0  ;;  %s1319_s11 = scalar_lea.hbm %s1810_s2, 128 }
  0x12   : > { %p1547_p11 = pnand %p1192_p10, %p1814_p1  ;;  %p1320_p0 = scmp.ne.s32.totalorder %s1810_s2, %s1319_s11 }
  0x13   : > { %s1821_s7 = scalar_select %p1553_p12, 1, 0 }
  0x14   : > { %p1321_p3 = pneg %p1547_p11  ;;  %p1326_p10 = scmp.lt.u32.totalorder %s1319_s11, %s1810_s2 }
  0x16   : > { %p1322_p5 = pnand %p1321_p3, %p1320_p0 }
  0x18   : > { %p1323_p7 = pneg %p1322_p5 }
  0x1a   : > { %p1328_p9 = pnand %p1326_p10, %p1323_p7 }
  0x1c   : > { %1331 = shalt.err (!%p1328_p9)
}
  0x1d   : > { %s1332_s16 = scalar_lea.vmem %s180_s28, 128  ;;  %p1340_p6 = scmp.lt.s32.totalorder %s180_s28, %s180_s28 }
  0x1e   : > { %p1333_p1 = scmp.ne.s32.totalorder %s180_s28, %s1332_s16  ;;  %p1341_p4 = scmp.lt.s32.totalorder %s1332_s16, %s1332_s16 }
  0x20   : > { %p1335_p2 = pnand %p1333_p1, %p1321_p3  ;;  %p1342_p8 = por %p1341_p4, %p1340_p6 }
  0x22   : > { %p1336_p13 = pneg %p1335_p2 }
  0x24   : > { %p1343_p12 = pnand %p1342_p8, %p1336_p13 }
  0x26   : > { %1346 = shalt.err (!%p1343_p12)
}
  0x27   : > { %1195 = dma.hbm_to_vmem [thread:$0]  (!%p1547_p11), %s1810_s2, 128, %s180_s28, [#allocation6]  }
  0x28   : > { %p1822_p1 = scmp.ne.s32.totalorder %s1821_s7, 0  ;;  %p37_p2 = scmp.eq.s32.totalorder %s1447_s21, 0 }
  0x29   : > { %p1823_p4 = scmp.ne.s32.totalorder %s1443_s20, %s1439_s19  ;;  %p1824_p6 = scmp.eq.s32.totalorder %s1516_s22, 1 }
  0x2a   : > { %s1579_s27 = scalar_select %p1822_p1, %s1443_s20, %s29_s8  }
  0x2b   : > { %p1587_p8 = por %p1824_p6, %p1823_p4  ;;  %p1205_p9 = scmp.lt.s32.totalorder %s1447_s21, 2 }
  0x2c   : > { %s196_s6 = sand.u32 1, %s1443_s20   ;;  %p1826_p12 = pmov %p1823_p4 }
  0x2d   : > { %s1179_s9 = smul.u32 24, %s196_s6  ;;  %s197_s14 = scalar_lea.sflag [#allocation3], %s196_s6 }
  0x2e   : > { %p38_p13 = por %p37_p2, %p1826_p12  ;;  %s1180_s10 = smul.u32 384, %s1447_s21 }
  0x2f   : > { %s200_s12 = scalar_lea.vmem [#allocation2], %s1179_s9  ;;  %s1352_s23 = scalar_lea.hbm %s1808_s0, 768 }
  0x30   : > { %p1597_p0 = pnand %p1205_p9, %p38_p13  ;;  %s1604_s8 = scalar_lea.hbm %s1808_s0, %s1180_s10 }
  0x31   : > { %s208_s13 = sshll.u32 %s200_s12, 4  ;;  %s1347_s15 = scalar_lea.hbm %s1604_s8, 384  ;;  %s1606_s13 = int_to_ptr.vmem [resolvable:$true] %s208_s13 }
  0x32   : > { %p1348_p11 = scmp.ne.s32.totalorder %s1604_s8, %s1347_s15  ;;  %p1349_p3 = pneg %p1597_p0 }
  0x33   : > { %p1353_p10 = scmp.lt.u32.totalorder %s1604_s8, %s1808_s0  ;;  %p1354_p1 = scmp.lt.u32.totalorder %s1352_s23, %s1347_s15 }
  0x34   : > { %p1350_p5 = pnand %p1349_p3, %p1348_p11  ;;  %p1356_p4 = scmp.lt.u32.totalorder %s1347_s15, %s1604_s8 }
  0x35   : > { %p1355_p2 = por %p1354_p1, %p1353_p10 }
  0x36   : > { %p1351_p7 = pneg %p1350_p5 }
  0x37   : > { %p1357_p6 = por %p1356_p4, %p1355_p2 }
  0x39   : > { %p1358_p9 = pnand %p1357_p6, %p1351_p7 }
  0x3b   : > { %1361 = shalt.err (!%p1358_p9)
}
  0x3c   : > { %s1362_s6 = scalar_lea.vmem %s1606_s13, 384  ;;  %s1450_s9 = smov [#allocation2]  }
  0x3d   : > { %p1363_p12 = scmp.ne.s32.totalorder %s1606_s13, %s1362_s6  ;;  %s1367_s7 = sshll.u32 %s1450_s9, 4  ;;  %s1368_s7 = int_to_ptr.vmem [resolvable:$false] %s1367_s7 }
  0x3e   : > { %s1369_s12 = scalar_lea.vmem %s1368_s7, 768  ;;  %p1370_p5 = scmp.lt.s32.totalorder %s1606_s13, %s1368_s7 }
  0x3f   : > { %p1365_p13 = pnand %p1363_p12, %p1349_p3  ;;  %p1371_p10 = scmp.lt.s32.totalorder %s1369_s12, %s1362_s6 }
  0x41   : > { %p1366_p11 = pneg %p1365_p13  ;;  %p1372_p1 = por %p1371_p10, %p1370_p5 }
  0x43   : > { %p1373_p2 = pnand %p1372_p1, %p1366_p11 }
  0x45   : > { %1376 = shalt.err (!%p1373_p2)
}
  0x46   : > { %1199 = dma.hbm_to_vmem [thread:$0]  (!%p1597_p0), %s1604_s8, 384, %s1606_s13, %s197_s14  }
  0x47   : > { %p1828_p7 = scmp.ne.s32.totalorder %s1819_s26, 0 }
  0x48   : > { %s1636_s15 = sand.u32 (!%p1828_p7), 1, %s1439_s19   ;;  %p1829_p3 = scmp.ne.s32.totalorder (!%p1828_p7), %s1817_s24, 0 }
  0x49   : > { %217 = sbr.rel (%p1828_p7) target bundleno = 956 (0x3bc), region = 40  ;;  %s220_s17 = scalar_lea.sflag (!%p1828_p7), [#allocation3], %s1636_s15 }
  0x4a   : > { %s1181_s16 = smul.u32 (!%p1828_p7), 24, %s1636_s15 }
  0x4c   : > { %s223_s23 = scalar_lea.vmem (!%p1828_p7), [#allocation2], %s1181_s16 }
  0x50   : > { %1422 = dma.done.wait (%p1829_p3), %s220_s17, 384  }
  0x51   : > { %1424 = vsyncadd (%p1829_p3), %s220_s17, 4294966912  ;;  %p1830_p4 = scmp.eq.s32.totalorder %s1516_s22, 0 }
  0x53   : > { %1426 = dma.done.wait (%p1830_p4), [#allocation6], 128   ;;  %p1831_p0 = pmov %p1830_p4 }
  0x54   : > { %v1451_v0 = vmov 0.0|0.0   ;;  %v255_v1 = vld [vmem:[%s223_s23 + $0x8] sm:$0xff]  ;;  %v256_v2 = vld [vmem:[%s223_s23 + $0x10] sm:$0xff]  ;;  %s1452_s26 = smov 126   ;;  %s1453_s11 = smov 127   ;;  %v254_v4 = vld [vmem:[%s223_s23] sm:$0xff] }
  0x55   : > { %1428 = vsyncadd (%p1831_p0), [#allocation6], 4294967168  ;;  %1133 = vmatprep.subr.bf16.mxu1 %v1451_v0  ;;  %v1259_v3 = vpack.i.bf16 %v256_v2, %v255_v1  ;;  %s1454_s24 = smov 110   ;;  %s1455_s8 = smov 109   ;;  %v1457_v5 = vmov 0.0   ;;  %vm1459_vm0 = vmmov 0  }
  0x56   : > { %s1456_s13 = smov 108   ;;  %426 = vmatprep.mubr.f32.mxu0 %v1457_v5  ;;  %s1458_s14 = smov 92   ;;  %1088 = vmatprep.mubr.msk.f32.mxu1 %vm1459_vm0, %v1457_v5  ;;  %vm268_vm1 = vcmask 1039360   ;;  %vm292_vm2 = vcmask 900096   ;;  %vm280_vm3 = vcmask 1031168   ;;  %vm304_vm4 = vcmask 891904  }
  0x57   : > { %1260 = vrot.lane.b32.xlu1 %v1259_v3, %s1452_s26  ;;  %1255 = vrot.lane.b32.xlu0 %v1259_v3, %s1453_s11  ;;  %s1460_s10 = smov 91   ;;  %s1461_s28 = smov 90   ;;  %vm316_vm5 = vcmask 883712   ;;  %vm328_vm6 = vcmask 752640   ;;  %vm340_vm7 = vcmask 744448   ;;  %vm352_vm8 = vcmask 736256  }
  0x58   : > { %v258_v62 = vld [vmem:[#allocation5] sm:$0xff]  ;;  %vm358_vm9 = vcmask 588800   ;;  %s1462_s7 = smov 19   ;;  %vm537_vm10 = vcmask 154624   ;;  %vm638_vm11 = vcmask 64512   ;;  %vm544_vm12 = vcmask 711680  }
  0x59   : > { %vm1040_vm13 = vmneg %vm537_vm10  ;;  %vm1463_vm14 = vmmov 1   ;;  %s1464_s6 = smov [#allocation7]  }
  0x5a   : > { %vm1164_vm15 = vmpackc.low %vm1463_vm14, %vm544_vm12  ;;  %s1381_s9 = sshll.u32 %s1464_s6, 4  ;;  %s1382_s9 = int_to_ptr.vmem [resolvable:$false] %s1381_s9 }
  0x5b   : > { %1265 = vrot.lane.b32.xlu1 %v1259_v3, %s1454_s24  ;;  %262 = vrot.lane.b32.xlu0 %v254_v4, %s1453_s11 }
  0x5f   : > { %286 = vrot.lane.b32.xlu1 %v254_v4, %s1454_s24  ;;  %274 = vrot.lane.b32.xlu0 %v254_v4, %s1452_s26 }
  0x63   : > { %302 = vrot.lane.b32.xlu1 %v256_v2, %s1455_s8  ;;  %300 = vrot.lane.b32.xlu0 %v255_v1, %s1455_s8 }
  0x67   : > { %298 = vrot.lane.b32.xlu1 %v254_v4, %s1455_s8  ;;  %1270 = vrot.lane.b32.xlu0 %v1259_v3, %s1456_s13 }
  0x6b   : > { %1275 = vrot.lane.b32.xlu1 %v1259_v3, %s1458_s14  ;;  %310 = vrot.lane.b32.xlu0 %v254_v4, %s1456_s13 }
  0x6f   : > { %322 = vrot.lane.b32.xlu1 %v254_v4, %s1458_s14  ;;  %1280 = vrot.lane.b32.xlu0 %v1259_v3, %s1460_s10 }
  0x73   : > { %348 = vrot.lane.b32.xlu1 %v255_v1, %s1461_s28  ;;  %334 = vrot.lane.b32.xlu0 %v254_v4, %s1460_s10 }
  0x77   : > { %346 = vrot.lane.b32.xlu1 %v254_v4, %s1461_s28  ;;  %350 = vrot.lane.b32.xlu0 %v256_v2, %s1461_s28 }
  0xc9   : > { %v1261_v6 = vpop.permute.xlu1 %1260  ;;  %v1256_v7 = vpop.permute.xlu0 %1255 }
  0xca   : > { %v1258_v8 = vunpack.i.h.bf16 %v1256_v7  ;;  %v1257_v9 = vunpack.i.l.bf16 %v1256_v7  ;;  %v1263_v10 = vunpack.i.h.bf16 %v1261_v6  ;;  %v1262_v11 = vunpack.i.l.bf16 %v1261_v6  ;;  %v257_v6 = vld [vmem:[%s1809_s1] sm:$0x7] }
  0xcc   : > { %v1134_v12 = vpack.c.bf16 %v1258_v8, %v256_v2  ;;  %v270_v13 = vsel %vm268_vm1, %v1257_v9, %v1258_v8  ;;  %v282_v22 = vsel %vm280_vm3, %v1262_v11, %v1263_v10  ;;  %v510_v2 = vlaneseq }
  0xcd   : > { %v1266_v14 = vpop.permute.xlu1 %1265  ;;  %v263_v15 = vpop.permute.xlu0 %262  ;;  %v1117_v16 = vpack.c.bf16 %v270_v13, %v255_v1 }
  0xce   : > { %v1268_v17 = vunpack.i.h.bf16 %v1266_v14  ;;  %v1267_v18 = vunpack.i.l.bf16 %v1266_v14  ;;  %v269_v19 = vsel %vm268_vm1, %v263_v15, %v1257_v9  ;;  %1135 = vmatpush3.bf16.msra.mxu1 %v1134_v12  ;;  %v511_v3 = vshrl.u32 %v510_v2, 7 }
  0xcf   : > { %1118 = vmatprep.subr.bf16.mxu0 %v1117_v16  ;;  %1136 = vmatprep.subr.bf16.mxu1 %v1451_v0  ;;  %v1119_v20 = vpack.c.bf16 %v269_v19, %v254_v4 }
  0xd0   : > { %v1137_v21 = vpack.c.bf16 %v1268_v17, %v1263_v10  ;;  %v294_v23 = vsel %vm292_vm2, %v1267_v18, %v1268_v17  ;;  %v520_v4 = vsub.s32 2, %v511_v3  ;;  %v516_v7 = vsub.s32 1, %v511_v3 }
  0xd1   : > { %v287_v24 = vpop.permute.xlu1 %286  ;;  %1120 = vmatpush1.bf16.msra.mxu0 %v1119_v20  ;;  %v275_v25 = vpop.permute.xlu0 %274  ;;  %v1121_v26 = vpack.c.bf16 %v294_v23, %v282_v22  ;;  %v512_v16 = vsub.s32 0, %v511_v3 }
  0xd2   : > { %v293_v27 = vsel %vm292_vm2, %v287_v24, %v1267_v18  ;;  %v281_v28 = vsel %vm280_vm3, %v275_v25, %v1262_v11  ;;  %1138 = vmatpush3.bf16.msra.mxu1 %v1137_v21  ;;  %v521_v10 = vrot.slane %v257_v6, %v520_v4  ;;  %v517_v18 = vrot.slane %v257_v6, %v516_v7 }
  0xd3   : > { %v1123_v29 = vpack.c.bf16 %v293_v27, %v281_v28  ;;  %1122 = vmatprep.subr.bf16.mxu0 %v1121_v26  ;;  %1139 = vmatprep.subr.bf16.mxu1 %v1451_v0  ;;  %v513_v22 = vrot.slane %v257_v6, %v512_v16 }
  0xd5   : > { %v303_v30 = vpop.permute.xlu1 %302  ;;  %1124 = vmatpush1.bf16.msra.mxu0 %v1123_v29  ;;  %v301_v31 = vpop.permute.xlu0 %300  ;;  %v637_v29 = vld [vmem:[%s1812_s4] sm:$0xf] }
  0xd6   : > { %v306_v36 = vsel %vm304_vm4, %v301_v31, %v303_v30 }
  0xd9   : > { %v299_v32 = vpop.permute.xlu1 %298  ;;  %v1271_v33 = vpop.permute.xlu0 %1270 }
  0xda   : > { %v1273_v34 = vunpack.i.h.bf16 %v1271_v33  ;;  %v1272_v35 = vunpack.i.l.bf16 %v1271_v33  ;;  %v305_v42 = vsel %vm304_vm4, %v299_v32, %v301_v31 }
  0xdc   : > { %v1140_v37 = vpack.c.bf16 %v1273_v34, %v303_v30  ;;  %v318_v38 = vsel %vm316_vm5, %v1272_v35, %v1273_v34 }
  0xdd   : > { %v1276_v39 = vpop.permute.xlu1 %1275  ;;  %v311_v40 = vpop.permute.xlu0 %310  ;;  %v1125_v41 = vpack.c.bf16 %v318_v38, %v306_v36 }
  0xde   : > { %v317_v43 = vsel %vm316_vm5, %v311_v40, %v1272_v35  ;;  %1141 = vmatpush3.bf16.msra.mxu1 %v1140_v37  ;;  %v1278_v45 = vunpack.i.h.bf16 %v1276_v39  ;;  %v1277_v46 = vunpack.i.l.bf16 %v1276_v39 }
  0xdf   : > { %v1127_v44 = vpack.c.bf16 %v317_v43, %v305_v42  ;;  %1126 = vmatprep.subr.bf16.mxu0 %v1125_v41  ;;  %1142 = vmatprep.subr.bf16.mxu1 %v1451_v0 }
  0xe0   : > { %v330_v52 = vsel %vm328_vm6, %v1277_v46, %v1278_v45 }
  0xe1   : > { %v323_v47 = vpop.permute.xlu1 %322  ;;  %v1281_v48 = vpop.permute.xlu0 %1280  ;;  %1128 = vmatpush1.bf16.msra.mxu0 %v1127_v44 }
  0xe2   : > { %v1283_v49 = vunpack.i.h.bf16 %v1281_v48  ;;  %v1282_v50 = vunpack.i.l.bf16 %v1281_v48  ;;  %v329_v57 = vsel %vm328_vm6, %v323_v47, %v1277_v46 }
  0xe4   : > { %v1143_v51 = vpack.c.bf16 %v1283_v49, %v1278_v45  ;;  %v342_v53 = vsel %vm340_vm7, %v1282_v50, %v1283_v49 }
  0xe5   : > { %v349_v54 = vpop.permute.xlu1 %348  ;;  %v335_v55 = vpop.permute.xlu0 %334  ;;  %v1129_v56 = vpack.c.bf16 %v342_v53, %v330_v52 }
  0xe6   : > { %v341_v58 = vsel %vm340_vm7, %v335_v55, %v1282_v50  ;;  %1144 = vmatpush3.bf16.msra.mxu1 %v1143_v51 }
  0xe7   : > { %v1131_v59 = vpack.c.bf16 %v341_v58, %v329_v57  ;;  %1130 = vmatprep.subr.bf16.mxu0 %v1129_v56  ;;  %1086 = vmatprep.subr.mxu1 %v1457_v5 }
  0xe9   : > { %v347_v60 = vpop.permute.xlu1 %346  ;;  %v351_v61 = vpop.permute.xlu0 %350  ;;  %1132 = vmatpush1.bf16.msra.mxu0 %v1131_v59 }
  0xea   : > { %1087 = vmatpush3.msra.mxu1 %v351_v61  ;;  %v354_v63 = vsel %vm352_vm8, %v349_v54, %v351_v61  ;;  %v353_v1 = vsel %vm352_vm8, %v347_v60, %v349_v54 }
  0xeb   : > { %378 = vmatprep.subr.mxu0 %v354_v63  ;;  %1091 = vmatprep.subr.mxu1 %v1457_v5 }
  0xec   : > { %1089 = vmatmul.mubr.msk.f32.vlgmr.msra.gmra.mrb[0].mxu1 %vm358_vm9, %v258_v62 }
  0xed   : > { %1092 = vmatpush3.msra.mxu1 %v303_v30  ;;  %379 = vmatpush1.msra.mxu0 %v353_v1 }
  0xee   : > { %1036 = vmatmul.mubr.msk.f32.vlgmr.msra.gmra.mrb[0].mxu0 %vm358_vm9, %v258_v62  ;;  %642 = vmatprep.subr.mxu0 %v306_v36 }
  0xef   : > { %643 = vmatpush1.msra.mxu0 %v305_v42  ;;  %1093 = vmatprep.mubr.msk.f32.mxu1 %vm1459_vm0, %v1457_v5 }
  0xf0   : > { %1162 = vmatprep.subr.bf16.mxu1 %v1451_v0  ;;  %706 = vmatprep.mubr.f32.mxu0 %v1457_v5 }
  0xf1   : > { %1094 = vmatmul.mubr.msk.f32.vlgmr.msra.gmra.mrb[2].mxu1 %vm638_vm11, %v637_v29 }
  0xf2   : > { %1038 = vmatmul.mubr.msk.f32.vlgmr.msra.gmra.mrb[2].mxu0 %vm638_vm11, %v637_v29  ;;  %1114 = vmatprep.mubr.msk.f32.mxu1 %vm1459_vm0, %v1457_v5  ;;  %vm1148_vm0 = vmpackc.low %vm1463_vm14, %vm1040_vm13 }
  0xf3   : > { %850 = vmatprep.mubr.f32.mxu0 %v1457_v5 }
 0x1bf   : > { %v499_v8 = vpop.f32.mrb[0].mxu1 }
 0x1c0   : > { %v505_v9 = vmul.f32 0.02, %v499_v8  ;;  %v1090_v11 = vpop.f32.mrb[1].mxu1 }
 0x1c1   : > { %v428_v12 = vpop.f32.mrb[0].mxu0 }
 0x1c2   : > { %v430_v13 = vpop.f32.mrb[1].mxu0  ;;  %v508_v14 = vmax.f32 %v499_v8, %v505_v9  ;;  %v503_v15 = vmul.f32 0.02, %v428_v12 }
 0x1c3   : > { %v504_v17 = vmul.f32 0.02, %v430_v13 }
 0x1c4   : > { %v527_v19 = vmul.f32 %v521_v10, %v508_v14  ;;  %v506_v21 = vmax.f32 %v428_v12, %v503_v15 }
 0x1c5   : > { %v507_v20 = vmax.f32 %v430_v13, %v504_v17 }
 0x1c6   : > { %535 = vrot.lane.b32.xlu1 %v527_v19, %s1462_s7  ;;  %v525_v24 = vmul.f32 %v513_v22, %v506_v21 }
 0x1c7   : > { %v526_v23 = vmul.f32 %v517_v18, %v507_v20 }
 0x1c9   : > { %533 = vrot.lane.b32.xlu0 %v526_v23, %s1462_s7 }
 0x1cd   : > { %531 = vrot.lane.b32.xlu0 %v525_v24, %s1462_s7  ;;  %s1383_s7 = scalar_lea.vmem %s1382_s9, 384 }
 0x238   : > { %v536_v28 = vpop.permute.xlu1 %535 }
 0x23b   : > { %v534_v25 = vpop.permute.xlu0 %533 }
 0x23c   : > { %v539_v30 = vsel %vm537_vm10, %v534_v25, %v536_v28  ;;  %v546_v28 = vld [vmem:[%s1811_s3] sm:$0xf] }
 0x23d   : > { %v545_v32 = vsel %vm544_vm12, %v539_v30, 0.0 }
 0x23f   : > { %v1700_v26 = vpop.permute.xlu0 %531 }
 0x240   : > { %v543_v27 = vsel %vm537_vm10, 0.0, %v1700_v26  ;;  %v538_v31 = vsel %vm537_vm10, %v1700_v26, %v534_v25 }
 0x241   : > { %560 = vrot.lane.b32.xlu1 %v543_v27, %s1452_s26  ;;  %549 = vrot.lane.b32.xlu0 %v543_v27, %s1453_s11  ;;  %v1294_v33 = vpack.i.bf16 %v545_v32, %v538_v31 }
 0x245   : > { %582 = vrot.lane.b32.xlu1 %v543_v27, %s1455_s8  ;;  %571 = vrot.lane.b32.xlu0 %v543_v27, %s1454_s24 }
 0x249   : > { %604 = vrot.lane.b32.xlu1 %v543_v27, %s1458_s14  ;;  %593 = vrot.lane.b32.xlu0 %v543_v27, %s1456_s13 }
 0x24d   : > { %1295 = vrot.lane.b32.xlu0 %v1294_v33, %s1454_s24  ;;  %1285 = vrot.lane.b32.xlu1 %v1294_v33, %s1453_s11  ;;  %s1183_s11 = smul.u32 192, %s1516_s22 }
 0x251   : > { %1305 = vrot.lane.b32.xlu0 %v1294_v33, %s1456_s13  ;;  %1290 = vrot.lane.b32.xlu1 %v1294_v33, %s1452_s26  ;;  %s1182_s26 = smul.u32 12, %s1636_s15 }
 0x253   : > { %s253_s24 = scalar_lea.vmem [#allocation7], %s1182_s26 }
 0x255   : > { %1315 = vrot.lane.b32.xlu0 %v1294_v33, %s1460_s10  ;;  %1300 = vrot.lane.b32.xlu1 %v1294_v33, %s1455_s8  ;;  %s949_s8 = sshll.u32 %s253_s24, 4  ;;  %s1766_s8 = int_to_ptr.vmem [resolvable:$true] %s949_s8 }
 0x256   : > { %s1377_s22 = scalar_lea.vmem %s1766_s8, 192  ;;  %p1384_p13 = scmp.lt.s32.totalorder %s1766_s8, %s1382_s9 }
 0x257   : > { %p1378_p6 = scmp.ne.s32.totalorder %s1766_s8, %s1377_s22  ;;  %p1385_p11 = scmp.lt.s32.totalorder %s1383_s7, %s1377_s22 }
 0x259   : > { %615 = vrot.lane.b32.xlu0 %v543_v27, %s1460_s10  ;;  %1310 = vrot.lane.b32.xlu1 %v1294_v33, %s1458_s14  ;;  %s1764_s10 = scalar_lea.hbm %s1813_s5, %s1183_s11  ;;  %p1379_p9 = pnand %p1378_p6, %p1587_p8 }
 0x25a   : > { %p1386_p5 = por %p1385_p11, %p1384_p13 }
 0x25b   : > { %p1380_p12 = pneg %p1379_p9 }
 0x25d   : > { %630 = vrot.lane.b32.xlu0 %v545_v32, %s1461_s28  ;;  %628 = vrot.lane.b32.xlu1 %v538_v31, %s1461_s28  ;;  %p1387_p10 = pnand %p1386_p5, %p1380_p12 }
 0x261   : > { %626 = vrot.lane.b32.xlu1 %v543_v27, %s1461_s28  ;;  %s935_s28 = scalar_lea.sflag [#allocation4], %s1636_s15 }
 0x2b3   : > { %v561_v34 = vpop.permute.xlu1 %560  ;;  %v550_v35 = vpop.permute.xlu0 %549 }
 0x2b7   : > { %v583_v36 = vpop.permute.xlu1 %582  ;;  %v572_v37 = vpop.permute.xlu0 %571 }
 0x2bb   : > { %v605_v38 = vpop.permute.xlu1 %604  ;;  %v594_v39 = vpop.permute.xlu0 %593 }
 0x2bf   : > { %v1296_v40 = vpop.permute.xlu0 %1295  ;;  %v1286_v41 = vpop.permute.xlu1 %1285 }
 0x2c0   : > { %v1288_v42 = vunpack.i.h.bf16 %v1286_v41  ;;  %v1287_v43 = vunpack.i.l.bf16 %v1286_v41  ;;  %v1298_v44 = vunpack.i.h.bf16 %v1296_v40  ;;  %v1297_v45 = vunpack.i.l.bf16 %v1296_v40 }
 0x2c2   : > { %v1163_v46 = vpack.c.bf16 %v1288_v42, %v539_v30  ;;  %v555_v47 = vsel %vm268_vm1, %v550_v35, %v1287_v43  ;;  %v556_v48 = vsel %vm268_vm1, %v1287_v43, %v1288_v42  ;;  %v577_v55 = vsel %vm292_vm2, %v572_v37, %v1297_v45 }
 0x2c3   : > { %v1147_v49 = vpack.c.bf16 %v555_v47, %v1700_v26  ;;  %v1306_v50 = vpop.permute.xlu0 %1305  ;;  %v1291_v51 = vpop.permute.xlu1 %1290  ;;  %v1145_v52 = vpack.c.bf16 %v556_v48, %v538_v31  ;;  %v578_v57 = vsel %vm292_vm2, %v1297_v45, %v1298_v44  ;;  %vm932_vm1 = vcmask 551936  }
 0x2c4   : > { %v1293_v53 = vunpack.i.h.bf16 %v1291_v51  ;;  %v1292_v54 = vunpack.i.l.bf16 %v1291_v51  ;;  %1165 = vmatpush3.bf16.msk.msra.mxu1 %vm1164_vm15, %v1163_v46  ;;  %v1307_v56 = vunpack.i.l.bf16 %v1306_v50  ;;  %v1308_v58 = vunpack.i.h.bf16 %v1306_v50 }
 0x2c5   : > { %1146 = vmatprep.subr.bf16.mxu0 %v1145_v52  ;;  %1166 = vmatprep.subr.bf16.mxu1 %v1451_v0 }
 0x2c6   : > { %v1167_v59 = vpack.c.bf16 %v1298_v44, %v1293_v53  ;;  %v566_v60 = vsel %vm280_vm3, %v561_v34, %v1292_v54  ;;  %1149 = vmatpush1.bf16.msk.msra.mxu0 %vm1148_vm0, %v1147_v49  ;;  %v567_v61 = vsel %vm280_vm3, %v1292_v54, %v1293_v53  ;;  %v599_v6 = vsel %vm316_vm5, %v594_v39, %v1307_v56 }
 0x2c7   : > { %v1152_v62 = vpack.c.bf16 %v577_v55, %v566_v60  ;;  %v1316_v63 = vpop.permute.xlu0 %1315  ;;  %v1301_v1 = vpop.permute.xlu1 %1300  ;;  %v1150_v2 = vpack.c.bf16 %v578_v57, %v567_v61  ;;  %v600_v12 = vsel %vm316_vm5, %v1307_v56, %v1308_v58 }
 0x2c8   : > { %v1303_v3 = vunpack.i.h.bf16 %v1301_v1  ;;  %v1302_v4 = vunpack.i.l.bf16 %v1301_v1  ;;  %1168 = vmatpush3.bf16.msra.mxu1 %v1167_v59  ;;  %v1318_v7 = vunpack.i.h.bf16 %v1316_v63  ;;  %v1317_v8 = vunpack.i.l.bf16 %v1316_v63 }
 0x2c9   : > { %1151 = vmatprep.subr.bf16.mxu0 %v1150_v2  ;;  %1169 = vmatprep.subr.bf16.mxu1 %v1451_v0 }
 0x2ca   : > { %v1170_v9 = vpack.c.bf16 %v1308_v58, %v1303_v3  ;;  %v588_v10 = vsel %vm304_vm4, %v583_v36, %v1302_v4  ;;  %1153 = vmatpush1.bf16.msra.mxu0 %v1152_v62  ;;  %v589_v11 = vsel %vm304_vm4, %v1302_v4, %v1303_v3  ;;  %v622_v19 = vsel %vm340_vm7, %v1317_v8, %v1318_v7 }
 0x2cb   : > { %v1156_v13 = vpack.c.bf16 %v599_v6, %v588_v10  ;;  %v616_v14 = vpop.permute.xlu0 %615  ;;  %v1311_v15 = vpop.permute.xlu1 %1310  ;;  %v1154_v16 = vpack.c.bf16 %v600_v12, %v589_v11 }
 0x2cc   : > { %v1313_v17 = vunpack.i.h.bf16 %v1311_v15  ;;  %v1312_v18 = vunpack.i.l.bf16 %v1311_v15  ;;  %1171 = vmatpush3.bf16.msra.mxu1 %v1170_v9  ;;  %v621_v20 = vsel %vm340_vm7, %v616_v14, %v1317_v8 }
 0x2cd   : > { %1155 = vmatprep.subr.bf16.mxu0 %v1154_v16  ;;  %1172 = vmatprep.subr.bf16.mxu1 %v1451_v0 }
 0x2ce   : > { %v1173_v21 = vpack.c.bf16 %v1318_v7, %v1313_v17  ;;  %v610_v22 = vsel %vm328_vm6, %v605_v38, %v1312_v18  ;;  %1157 = vmatpush1.bf16.msra.mxu0 %v1156_v13  ;;  %v611_v23 = vsel %vm328_vm6, %v1312_v18, %v1313_v17 }
 0x2cf   : > { %v1160_v24 = vpack.c.bf16 %v621_v20, %v610_v22  ;;  %v631_v25 = vpop.permute.xlu0 %630  ;;  %v629_v26 = vpop.permute.xlu1 %628  ;;  %v1158_v27 = vpack.c.bf16 %v622_v19, %v611_v23 }
 0x2d0   : > { %1174 = vmatpush3.bf16.msra.mxu1 %v1173_v21  ;;  %v633_v0 = vsel %vm352_vm8, %v629_v26, %v631_v25 }
 0x2d1   : > { %1159 = vmatprep.subr.bf16.mxu0 %v1158_v27  ;;  %1112 = vmatprep.subr.mxu1 %v1457_v5 }
 0x2d2   : > { %1161 = vmatpush1.bf16.msra.mxu0 %v1160_v24 }
 0x2d3   : > { %v627_v29 = vpop.permute.xlu1 %626  ;;  %802 = vmatprep.subr.mxu0 %v633_v0 }
 0x2d4   : > { %v632_v30 = vsel %vm352_vm8, %v627_v29, %v629_v26  ;;  %1113 = vmatpush3.msra.mxu1 %v631_v25 }
 0x2d5   : > { %1115 = vmatmul.mubr.msk.f32.vlgmr.msra.gmra.mrb[2].mxu1 %vm358_vm9, %v546_v28 }
 0x2d6   : > { %803 = vmatpush1.msra.mxu0 %v632_v30 }
 0x2d7   : > { %1042 = vmatmul.mubr.msk.f32.vlgmr.msra.gmra.mrb[2].mxu0 %vm358_vm9, %v546_v28 }
 0x3a8   : > { %v923_v5 = vpop.f32.mrb[2].mxu1 }
 0x3a9   : > { %933 = vst.msk [vmem:[%s253_s24 + $0x8] sm:$0xf] %vm932_vm1, %v923_v5  ;;  %v1116_v31 = vpop.f32.mrb[3].mxu1 }
 0x3aa   : > { %v852_v32 = vpop.f32.mrb[2].mxu0 }
 0x3ab   : > { %v854_v33 = vpop.f32.mrb[3].mxu0 }
 0x3ac   : > { %v929_v34 = vcombine.low %v852_v32, %v854_v33 }
 0x3ae   : > { %931 = vst [vmem:[%s253_s24] sm:$0xff] %v929_v34 }
 0x3af   : > { %1390 = shalt.err (!%p1387_p10)
}
 0x3b0   : > { %s1391_s15 = scalar_lea.hbm %s1764_s10, 192  ;;  %s1395_s17 = scalar_lea.hbm %s1813_s5, 384 }
 0x3b1   : > { %p1392_p1 = scmp.ne.s32.totalorder %s1764_s10, %s1391_s15  ;;  %p1396_p3 = scmp.lt.u32.totalorder %s1764_s10, %s1813_s5 }
 0x3b2   : > { %p1397_p4 = scmp.lt.u32.totalorder %s1395_s17, %s1391_s15  ;;  %p1399_p6 = scmp.lt.u32.totalorder %s1391_s15, %s1764_s10 }
 0x3b3   : > { %p1393_p2 = pnand %p1392_p1, %p1587_p8 }
 0x3b4   : > { %p1398_p0 = por %p1397_p4, %p1396_p3 }
 0x3b5   : > { %p1394_p7 = pneg %p1393_p2 }
 0x3b6   : > { %p1400_p9 = por %p1399_p6, %p1398_p0 }
 0x3b8   : > { %p1401_p12 = pnand %p1400_p9, %p1394_p7 }
 0x3ba   : > { %1404 = shalt.err (!%p1401_p12)
}
 0x3bb   : > { %1190 = dma.vmem_to_hbm [thread:$0]  (%p1587_p8), %s1766_s8, 192, %s1764_s10, %s935_s28  }
 0x3bc PF: > { %s961_s11 = sand.u32 1, %s1435_s18   ;;  %p1832_p13 = scmp.ne.s32.totalorder %s1818_s25, 0 }
 0x3bd   : > { %p1833_p11 = scmp.ge.s32.totalorder %s1447_s21, 2  ;;  %s962_s24 = scalar_lea.sflag [#allocation4], %s961_s11 }
 0x3bf   : > { %p1201_p5 = pnand %p1833_p11, %p1832_p13 }
 0x3c1   : > { %1430 = dma.done.wait (!%p1201_p5), %s962_s24, 192  }
 0x3c2   : > { %1432 = vsyncadd (!%p1201_p5), %s962_s24, 4294967104  ;;  %p19_p10 = scmp.ge.s32.totalorder %s1543_s29, 4   ;;  %s1834_s18 = smov %s1439_s19 }
 0x3c3   : > { %s1835_s19 = smov %s1443_s20  ;;  %s1836_s20 = smov %s1579_s27 }
 0x3c4   : > { %s1837_s21 = smov %s1543_s29  ;;  %21 = sbr.rel (!%p19_p10) target bundleno = 6 (0x6), region = 89 }
 0x3cb   :  { %967 = vsyncpa [#allocation3], 1 }
 0x3cc   :  { %969 = vsyncpa [#allocation3 + $0x1], 1 }
 0x3cd   :  { %970 = vsyncpa [#allocation6], 1 }
 0x3ce   :  { %971 = vsyncpa [#allocation4], 1 }
 0x3cf   :  { %973 = vsyncpa [#allocation4 + $0x1], 1 }

</bundles_post_ra>
